<compile_context>
chip_gen: v6e
topology: v6e:2x2x1
jax: 0.10.0
libtpu: 0.0.40
codegen_flags: <defaults>
</compile_context>

<pallas_src>
import functools
import numpy as np
import jax
import jax.numpy as jnp
from jax.experimental import pallas as pl
from jax.experimental.pallas import tpu as pltpu

EPS = 1e-5
F32 = jnp.float32
BF16 = jnp.bfloat16

# MXU-aligned tile preferences.  A tile (512 x K<=1152) bf16 ~1.2 MiB, B tile
# (K x 256) bf16 ~0.6 MiB: fits the default scoped VMEM with double buffering on
# v5e (16 MiB), v6e (32 MiB) and v7x (32 MiB scoped / 64 MiB physical).
_TM_PREF = 512
_TN_PREF = 256


def _round_up(x, m):
    return ((x + m - 1) // m) * m


def _apply_act(y, act):
    if act == "relu":
        return jnp.maximum(y, 0.0)
    if act == "sigmoid":
        return jax.nn.sigmoid(y)
    return y


def _pad2(a, rows, cols, dtype):
    """Cast + pad a 2-D operand, skipping both when they are no-ops."""
    if a.dtype != dtype:
        a = a.astype(dtype)
    r, c = a.shape
    if r != rows or c != cols:
        a = jnp.pad(a, ((0, rows - r), (0, cols - c)))
    return a


# ---------------------------------------------------------------------------
# Pallas kernels
# ---------------------------------------------------------------------------
def _matmul_kernel(a_ref, b_ref, scale_ref, shift_ref, *rest, act, extra_op):
    if extra_op is None:
        (o_ref,) = rest
        extra_ref = None
    else:
        extra_ref, o_ref = rest
    y = jnp.dot(a_ref[...], b_ref[...], preferred_element_type=jnp.float32)
    y = y * scale_ref[...] + shift_ref[...]
    if extra_op == "add":
        y = y + extra_ref[...].astype(jnp.float32)
    elif extra_op == "mul":
        y = y * extra_ref[...].astype(jnp.float32)
    o_ref[...] = _apply_act(y, act).astype(o_ref.dtype)


def pallas_matmul(a, b, scale, shift, act="none", extra=None, extra_op=None,
                  out_dtype=BF16):
    """(M,K)@(K,N) * bn_scale + bn_shift [(+|*) extra] [act].

    Full-K tiles (K <= 1152 in this model) -> purely parallel 2-D grid, the
    accumulation happens inside a single jnp.dot, BN/residual/act in the epilogue.
    """
    m, k = a.shape
    k2, n = b.shape
    assert k == k2
    tm = min(_TM_PREF, _round_up(m, 16))      # 16 rows: full bf16 sublane packing
    kp = _round_up(k, 128)
    tn = min(_TN_PREF, _round_up(n, 128))
    mp = _round_up(m, tm)
    # v7x megacore: ensure >=2 parallel tiles whenever the layer allows it.
    if mp // tm == 1 and _round_up(n, tn) // tn == 1 and _round_up(n, 128) >= 256:
        tn = 128
    np_pad = _round_up(n, tn)

    a_p = _pad2(a, mp, kp, BF16)
    b_p = _pad2(b, kp, np_pad, BF16)
    sc = _pad2(scale.reshape(1, n), 1, np_pad, F32)
    sh = _pad2(shift.reshape(1, n), 1, np_pad, F32)

    in_specs = [
        pl.BlockSpec((tm, kp), lambda i, j: (i, 0)),
        pl.BlockSpec((kp, tn), lambda i, j: (0, j)),
        pl.BlockSpec((1, tn), lambda i, j: (0, j)),
        pl.BlockSpec((1, tn), lambda i, j: (0, j)),
    ]
    operands = [a_p, b_p, sc, sh]
    use_extra = extra is not None
    if use_extra:
        operands.append(_pad2(extra, mp, np_pad, BF16))
        in_specs.append(pl.BlockSpec((tm, tn), lambda i, j: (i, j)))

    out = pl.pallas_call(
        functools.partial(_matmul_kernel, act=act,
                          extra_op=extra_op if use_extra else None),
        grid=(mp // tm, np_pad // tn),
        in_specs=in_specs,
        out_specs=pl.BlockSpec((tm, tn), lambda i, j: (i, j)),
        out_shape=jax.ShapeDtypeStruct((mp, np_pad), out_dtype),
        compiler_params=pltpu.CompilerParams(
            dimension_semantics=("parallel", "parallel")),
    )(*operands)
    return out[:m, :n]


def _dw_kernel(x_ref, w_ref, scale_ref, shift_ref, o_ref, *, taps, act):
    w = w_ref[...]
    acc = x_ref[0].astype(jnp.float32) * w[0:1, :]
    for t in range(1, taps):
        acc = acc + x_ref[t].astype(jnp.float32) * w[t:t + 1, :]
    y = acc * scale_ref[...] + shift_ref[...]
    o_ref[...] = _apply_act(y, act).astype(o_ref.dtype)


def pallas_dw(x_stack, w_row, scale_row, shift_row, act="none", out_dtype=BF16):
    """Tap-wise multiply-accumulate over a (taps, rows, lanes) stack, fused BN+act."""
    taps, r, l = x_stack.shape
    tr = min(256, _round_up(r, 8))
    tl = min(512, _round_up(l, 128))
    rp, lp = _round_up(r, tr), _round_up(l, tl)
    x_p = x_stack if x_stack.dtype == BF16 else x_stack.astype(BF16)
    if (rp, lp) != (r, l):
        x_p = jnp.pad(x_p, ((0, 0), (0, rp - r), (0, lp - l)))
    w_p = w_row.astype(F32)
    sc = scale_row.reshape(1, l).astype(F32)
    sh = shift_row.reshape(1, l).astype(F32)
    if lp != l:
        w_p = jnp.pad(w_p, ((0, 0), (0, lp - l)))
        sc = jnp.pad(sc, ((0, 0), (0, lp - l)))
        sh = jnp.pad(sh, ((0, 0), (0, lp - l)))
    out = pl.pallas_call(
        functools.partial(_dw_kernel, taps=taps, act=act),
        grid=(rp // tr, lp // tl),
        in_specs=[
            pl.BlockSpec((taps, tr, tl), lambda i, j: (0, i, j)),
            pl.BlockSpec((taps, tl), lambda i, j: (0, j)),
            pl.BlockSpec((1, tl), lambda i, j: (0, j)),
            pl.BlockSpec((1, tl), lambda i, j: (0, j)),
        ],
        out_specs=pl.BlockSpec((tr, tl), lambda i, j: (i, j)),
        out_shape=jax.ShapeDtypeStruct((rp, lp), out_dtype),
        compiler_params=pltpu.CompilerParams(
            dimension_semantics=("parallel", "parallel")),
    )(x_p, w_p, sc, sh)
    return out[:r, :l]


def _dw_mult_kernel(x_ref, w_ref, scale_ref, shift_ref, o_ref, *, taps, mult, act):
    # x_ref: (taps, tr, cin); w_ref: (mult*taps, cin) with row index = m*taps + t.
    # The 6x channel replication happens here in VMEM; output channel order is
    # (m, c) -- downstream weights are permuted by the caller to compensate.
    w = w_ref[...]
    x0 = x_ref[0].astype(jnp.float32)
    accs = [x0 * w[m * taps:m * taps + 1, :] for m in range(mult)]
    for t in range(1, taps):
        xt = x_ref[t].astype(jnp.float32)
        for m in range(mult):
            accs[m] = accs[m] + xt * w[m * taps + t:m * taps + t + 1, :]
    y = jnp.concatenate(accs, axis=-1)                  # (tr, mult*cin)
    y = y * scale_ref[...] + shift_ref[...]
    o_ref[...] = _apply_act(y, act).astype(o_ref.dtype)


def pallas_dw_mult(x_stack, w_mc, scale_mc, shift_mc, mult, act="none",
                   out_dtype=BF16):
    taps, r, cin = x_stack.shape
    tr = min(512, _round_up(r, 8))
    rp = _round_up(r, tr)
    x_p = x_stack if x_stack.dtype == BF16 else x_stack.astype(BF16)
    if rp != r:
        x_p = jnp.pad(x_p, ((0, 0), (0, rp - r), (0, 0)))
    out = pl.pallas_call(
        functools.partial(_dw_mult_kernel, taps=taps, mult=mult, act=act),
        grid=(rp // tr,),
        in_specs=[
            pl.BlockSpec((taps, tr, cin), lambda i: (0, i, 0)),
            pl.BlockSpec((mult * taps, cin), lambda i: (0, 0)),
            pl.BlockSpec((1, mult * cin), lambda i: (0, 0)),
            pl.BlockSpec((1, mult * cin), lambda i: (0, 0)),
        ],
        out_specs=pl.BlockSpec((tr, mult * cin), lambda i: (i, 0)),
        out_shape=jax.ShapeDtypeStruct((rp, mult * cin), out_dtype),
        compiler_params=pltpu.CompilerParams(dimension_semantics=("parallel",)),
    )(x_p, w_mc.astype(F32), scale_mc.astype(F32), shift_mc.astype(F32))
    return out[:r]


def _max_kernel(x_ref, o_ref, *, taps):
    m = x_ref[0]
    for t in range(1, taps):
        m = jnp.maximum(m, x_ref[t])
    o_ref[...] = m.astype(o_ref.dtype)


def pallas_maxreduce(x_stack, out_dtype=BF16):
    taps, r, l = x_stack.shape
    tr = min(256, _round_up(r, 8))
    tl = min(512, _round_up(l, 128))
    rp, lp = _round_up(r, tr), _round_up(l, tl)
    x_p = x_stack if x_stack.dtype == BF16 else x_stack.astype(BF16)
    if (rp, lp) != (r, l):
        x_p = jnp.pad(x_p, ((0, 0), (0, rp - r), (0, lp - l)))
    out = pl.pallas_call(
        functools.partial(_max_kernel, taps=taps),
        grid=(rp // tr, lp // tl),
        in_specs=[pl.BlockSpec((taps, tr, tl), lambda i, j: (0, i, j))],
        out_specs=pl.BlockSpec((tr, tl), lambda i, j: (i, j)),
        out_shape=jax.ShapeDtypeStruct((rp, lp), out_dtype),
        compiler_params=pltpu.CompilerParams(
            dimension_semantics=("parallel", "parallel")),
    )(x_p)
    return out[:r, :l]


def _gap_kernel(x_ref, scale_ref, o_ref, acc_ref, *, inv_count):
    j = pl.program_id(1)

    @pl.when(j == 0)
    def _init():
        acc_ref[...] = jnp.zeros_like(acc_ref)

    acc_ref[...] += jnp.sum(x_ref[0].astype(jnp.float32), axis=0, keepdims=True)

    @pl.when(j == pl.num_programs(1) - 1)
    def _finalize():
        o_ref[0] = (acc_ref[...] * inv_count) * scale_ref[...]


def pallas_gap(x_nlc, scale):
    """Global average pool over the middle axis, fused BN scale; tiled reduction."""
    n, l, c = x_nlc.shape
    cp = _round_up(c, 128)
    tl = min(512, _round_up(l, 8))
    lp = _round_up(l, tl)
    x_p = x_nlc if x_nlc.dtype == BF16 else x_nlc.astype(BF16)
    if (lp, cp) != (l, c):
        x_p = jnp.pad(x_p, ((0, 0), (0, lp - l), (0, cp - c)))
    sc = _pad2(scale.reshape(1, c), 1, cp, F32)
    out = pl.pallas_call(
        functools.partial(_gap_kernel, inv_count=1.0 / float(l)),
        grid=(n, lp // tl),
        in_specs=[
            pl.BlockSpec((1, tl, cp), lambda b, j: (b, j, 0)),
            pl.BlockSpec((1, cp), lambda b, j: (0, 0)),
        ],
        out_specs=pl.BlockSpec((1, 1, cp), lambda b, j: (b, 0, 0)),
        out_shape=jax.ShapeDtypeStruct((n, 1, cp), F32),
        scratch_shapes=[pltpu.VMEM((1, cp), jnp.float32)],
        compiler_params=pltpu.CompilerParams(
            dimension_semantics=("parallel", "arbitrary")),
    )(x_p, sc)
    return out[:, 0, :c]


def _ew_kernel(a_ref, b_ref, o_ref, *, op, act):
    a = a_ref[...].astype(jnp.float32)
    b = b_ref[...].astype(jnp.float32)
    y = a * b if op == "mul" else a + b
    o_ref[...] = _apply_act(y, act).astype(o_ref.dtype)


def pallas_ew(a, b, op, act="none", out_dtype=BF16):
    shape = a.shape
    c = shape[-1]
    a2 = a.reshape(-1, c)
    b2 = b.reshape(-1, c)
    r = a2.shape[0]
    tr = min(256, _round_up(r, 8))
    tl = min(512, _round_up(c, 128))
    rp, cp = _round_up(r, tr), _round_up(c, tl)
    a_p = _pad2(a2, rp, cp, BF16)
    b_p = _pad2(b2, rp, cp, BF16)
    out = pl.pallas_call(
        functools.partial(_ew_kernel, op=op, act=act),
        grid=(rp // tr, cp // tl),
        in_specs=[pl.BlockSpec((tr, tl), lambda i, j: (i, j)),
                  pl.BlockSpec((tr, tl), lambda i, j: (i, j))],
        out_specs=pl.BlockSpec((tr, tl), lambda i, j: (i, j)),
        out_shape=jax.ShapeDtypeStruct((rp, cp), out_dtype),
        compiler_params=pltpu.CompilerParams(
            dimension_semantics=("parallel", "parallel")),
    )(a_p, b_p)
    return out[:r, :c].reshape(shape)


def _bcast_add_kernel(x_ref, g_ref, o_ref):
    o_ref[0] = (x_ref[0].astype(jnp.float32) +
                g_ref[0].astype(jnp.float32)).astype(o_ref.dtype)


def pallas_bcast_add(x_nhwc, g_n11c, out_dtype=BF16):
    """x + g with g broadcast over H,W; the broadcast happens in VMEM."""
    n, h, w, c = x_nhwc.shape
    hw = h * w
    cp = _round_up(c, 128)
    thw = min(256, _round_up(hw, 8))
    hwp = _round_up(hw, thw)
    x2 = x_nhwc.reshape(n, hw, c)
    if x2.dtype != BF16:
        x2 = x2.astype(BF16)
    if (hwp, cp) != (hw, c):
        x2 = jnp.pad(x2, ((0, 0), (0, hwp - hw), (0, cp - c)))
    g2 = g_n11c.reshape(n, 1, c).astype(F32)
    if cp != c:
        g2 = jnp.pad(g2, ((0, 0), (0, 0), (0, cp - c)))
    out = pl.pallas_call(
        _bcast_add_kernel,
        grid=(n, hwp // thw),
        in_specs=[pl.BlockSpec((1, thw, cp), lambda b, i: (b, i, 0)),
                  pl.BlockSpec((1, 1, cp), lambda b, i: (b, 0, 0))],
        out_specs=pl.BlockSpec((1, thw, cp), lambda b, i: (b, i, 0)),
        out_shape=jax.ShapeDtypeStruct((n, hwp, cp), out_dtype),
        compiler_params=pltpu.CompilerParams(
            dimension_semantics=("parallel", "parallel")),
    )(x2, g2)
    return out[:, :hw, :c].reshape(n, h, w, c)


# ---------------------------------------------------------------------------
# Bilinear resize: two bf16 MXU matmuls per (batch, row-block) grid step.
# ---------------------------------------------------------------------------
def _resize_kron_kernel(mh_ref, x_ref, k_ref, *rest, act, has_extra):
    # Small-channel path (seg heads): the channel identity is folded into the
    # W-interp matrix, so everything is a plain 2-D matmul with lane-dense
    # (out_w*c) output stores.  Activation is applied before the fused extra add.
    if has_extra:
        extra_ref, o_ref = rest
    else:
        (o_ref,) = rest
        extra_ref = None
    t = jnp.dot(mh_ref[...], x_ref[0], preferred_element_type=jnp.float32)
    y = jnp.dot(t.astype(BF16), k_ref[...], preferred_element_type=jnp.float32)
    y = _apply_act(y, act)
    if has_extra:
        y = y + extra_ref[0].astype(jnp.float32)
    o_ref[0] = y.astype(o_ref.dtype)


def _resize_sep_kernel(mh_ref, x_ref, mw_ref, *rest, act, has_extra, w, c, out_w):
    # Wide-channel path (BGA, c=128): H-interp matmul, then a batched matmul
    # over the row block for the W interpolation.
    if has_extra:
        extra_ref, o_ref = rest
    else:
        (o_ref,) = rest
        extra_ref = None
    tb = mh_ref.shape[0]
    t = jnp.dot(mh_ref[...], x_ref[0], preferred_element_type=jnp.float32)
    t = t.reshape(tb, w, c).astype(BF16)
    mwb = jnp.broadcast_to(mw_ref[...][None, :, :], (tb, out_w, w))
    y = jnp.einsum('opw,owc->opc', mwb, t, preferred_element_type=jnp.float32)
    y = _apply_act(y, act)
    y = y.reshape(tb, out_w * c)
    if has_extra:
        y = y + extra_ref[0].astype(jnp.float32)
    o_ref[0] = y.astype(o_ref.dtype)


def _bilinear_matrix(in_size, out_size, align_corners):
    m = np.zeros((out_size, in_size), np.float32)
    for o in range(out_size):
        if align_corners:
            src = 0.0 if out_size == 1 else o * (in_size - 1) / (out_size - 1)
        else:
            src = max((o + 0.5) * in_size / out_size - 0.5, 0.0)
        i0 = min(int(np.floor(src)), in_size - 1)
        i1 = min(i0 + 1, in_size - 1)
        w1 = src - np.floor(src)
        m[o, i0] += 1.0 - w1
        m[o, i1] += w1
    return m


def resize_bilinear(x, out_h, out_w, align_corners, act="none", extra=None,
                    out_dtype=BF16):
    """Fused bilinear resize (optional sigmoid / fused '+extra' epilogue)."""
    n, h, w, c = x.shape
    mh = _bilinear_matrix(h, out_h, align_corners)
    mw = _bilinear_matrix(w, out_w, align_corners)
    lanes = out_w * c
    x2 = x.reshape(n, h, w * c)
    if x2.dtype != BF16:
        x2 = x2.astype(BF16)
    # Row block: biggest that keeps the f32 output block around <= 2 MiB.
    tb = min(_round_up(out_h, 8),
             max(8, ((2 << 20) // max(lanes * 4, 1)) // 8 * 8))
    out_hp = _round_up(out_h, tb)
    mh_p = np.zeros((out_hp, h), np.float32)
    mh_p[:out_h] = mh
    mh_j = jnp.asarray(mh_p, dtype=BF16)
    has_extra = extra is not None

    operands = [mh_j, x2]
    in_specs = [
        pl.BlockSpec((tb, h), lambda b, i: (i, 0)),
        pl.BlockSpec((1, h, w * c), lambda b, i: (b, 0, 0)),
    ]
    if c <= 32:
        kron = (mw.T[:, None, :, None] *
                np.eye(c, dtype=np.float32)[None, :, None, :]).reshape(w * c, lanes)
        operands.append(jnp.asarray(kron, dtype=BF16))
        in_specs.append(pl.BlockSpec((w * c, lanes), lambda b, i: (0, 0)))
        kern = functools.partial(_resize_kron_kernel, act=act, has_extra=has_extra)
    else:
        operands.append(jnp.asarray(mw, dtype=BF16))
        in_specs.append(pl.BlockSpec((out_w, w), lambda b, i: (0, 0)))
        kern = functools.partial(_resize_sep_kernel, act=act, has_extra=has_extra,
                                 w=w, c=c, out_w=out_w)
    if has_extra:
        e2 = extra.reshape(n, out_h, lanes)
        if e2.dtype != BF16:
            e2 = e2.astype(BF16)
        if out_hp != out_h:
            e2 = jnp.pad(e2, ((0, 0), (0, out_hp - out_h), (0, 0)))
        operands.append(e2)
        in_specs.append(pl.BlockSpec((1, tb, lanes), lambda b, i: (b, i, 0)))

    out = pl.pallas_call(
        kern,
        grid=(n, out_hp // tb),
        in_specs=in_specs,
        out_specs=pl.BlockSpec((1, tb, lanes), lambda b, i: (b, i, 0)),
        out_shape=jax.ShapeDtypeStruct((n, out_hp, lanes), out_dtype),
        compiler_params=pltpu.CompilerParams(
            dimension_semantics=("parallel", "parallel")),
    )(*operands)
    if out_hp != out_h:
        out = out[:, :out_h, :]
    return out.reshape(n, out_h, out_w, c)


# ---------------------------------------------------------------------------
# Glue: conv / pool wrappers
# ---------------------------------------------------------------------------
def _shifted_views(xp, kh, kw, stride, ho, wo):
    views = []
    for i in range(kh):
        for j in range(kw):
            views.append(xp[:, i:i + stride * (ho - 1) + 1:stride,
                             j:j + stride * (wo - 1) + 1:stride, :])
    return views


def conv2d(x, w_oihw, stride=1, padding=0, scale=None, shift=None, act="none",
           bias=None, extra=None, extra_op=None, out_dtype=BF16):
    cout, cin, kh, kw = w_oihw.shape
    n, h, w, _ = x.shape
    if scale is None:
        scale = jnp.ones((cout,), F32)
    if shift is None:
        shift = jnp.zeros((cout,), F32)
    if bias is not None:
        shift = shift + bias * scale
    if kh == 1 and kw == 1 and stride == 1 and padding == 0:
        ho, wo = h, w
        a = x.reshape(n * h * w, cin)
        bmat = w_oihw.reshape(cout, cin).T
    else:
        # TODO(synk): im2col materializes a kh*kw-expanded patch tensor in HBM;
        # an in-kernel shifted-window DMA conv would cut this extra traffic.
        xp = jnp.pad(x, ((0, 0), (padding, padding), (padding, padding), (0, 0)))
        ho = (h + 2 * padding - kh) // stride + 1
        wo = (w + 2 * padding - kw) // stride + 1
        patches = jnp.concatenate(_shifted_views(xp, kh, kw, stride, ho, wo), axis=-1)
        a = patches.reshape(n * ho * wo, kh * kw * cin)
        bmat = jnp.transpose(w_oihw, (2, 3, 1, 0)).reshape(kh * kw * cin, cout)
    e2 = None if extra is None else extra.reshape(n * ho * wo, cout)
    y = pallas_matmul(a, bmat, scale, shift, act, extra=e2, extra_op=extra_op,
                      out_dtype=out_dtype)
    return y.reshape(n, ho, wo, cout)


def _expansion_perm(cin, mult):
    # kernel-output lane (m*cin + c) holds torch expansion channel (c*mult + m)
    return np.arange(cin * mult).reshape(cin, mult).T.reshape(-1)


def dwconv2d(x, w_oihw, stride=1, padding=1, scale=None, shift=None, act="none"):
    """Depthwise conv (groups == in_channels), optional channel multiplier.

    For multiplier > 1 (GE layers, ratio=6) the channel replication happens in
    VMEM inside the kernel (no jnp.repeat in HBM); the output expansion channels
    come out in (m, c) order, so callers permute downstream weights via
    _expansion_perm to keep the math identical to PyTorch's grouped conv.
    """
    cout, _, kh, kw = w_oihw.shape
    n, h, w, cin = x.shape
    mult = cout // cin
    xp = jnp.pad(x, ((0, 0), (padding, padding), (padding, padding), (0, 0)))
    ho = (h + 2 * padding - kh) // stride + 1
    wo = (w + 2 * padding - kw) // stride + 1
    views = _shifted_views(xp, kh, kw, stride, ho, wo)
    taps = kh * kw
    if scale is None:
        scale = jnp.ones((cout,), F32)
    if shift is None:
        shift = jnp.zeros((cout,), F32)
    if mult == 1:
        # TODO(synk): the taps stack is still materialized in HBM (kh*kw reads).
        xs = jnp.stack(views, axis=0).reshape(taps, n * ho, wo * cin)
        wt = jnp.transpose(w_oihw.reshape(cout, taps), (1, 0))      # (taps, cout)
        wt = jnp.tile(wt, (1, wo))                                  # (taps, wo*cout)
        y = pallas_dw(xs, wt, jnp.tile(scale, (wo,)), jnp.tile(shift, (wo,)), act)
        return y.reshape(n, ho, wo, cout)
    xs = jnp.stack(views, axis=0).reshape(taps, n * ho * wo, cin)
    w_mc = jnp.transpose(w_oihw.reshape(cin, mult, taps), (1, 2, 0))  # (mult,taps,cin)
    w_mc = w_mc.reshape(mult * taps, cin)
    sc_mc = jnp.transpose(scale.reshape(cin, mult), (1, 0)).reshape(1, mult * cin)
    sh_mc = jnp.transpose(shift.reshape(cin, mult), (1, 0)).reshape(1, mult * cin)
    y = pallas_dw_mult(xs, w_mc, sc_mc, sh_mc, mult, act)
    return y.reshape(n, ho, wo, cout)        # channels in (m, c) order


def avgpool2d(x, k=3, stride=2, padding=1):
    n, h, w, c = x.shape
    xp = jnp.pad(x, ((0, 0), (padding, padding), (padding, padding), (0, 0)))
    ho = (h + 2 * padding - k) // stride + 1
    wo = (w + 2 * padding - k) // stride + 1
    xs = jnp.stack(_shifted_views(xp, k, k, stride, ho, wo), axis=0)
    xs = xs.reshape(k * k, n * ho, wo * c)
    wt = jnp.full((k * k, wo * c), 1.0 / (k * k), F32)  # count_include_pad=True
    y = pallas_dw(xs, wt, jnp.ones((wo * c,), F32), jnp.zeros((wo * c,), F32), "none")
    return y.reshape(n, ho, wo, c)


def maxpool2d(x, k=3, stride=2, padding=1):
    n, h, w, c = x.shape
    xp = jnp.pad(x, ((0, 0), (padding, padding), (padding, padding), (0, 0)),
                 constant_values=-jnp.inf)
    ho = (h + 2 * padding - k) // stride + 1
    wo = (w + 2 * padding - k) // stride + 1
    xs = jnp.stack(_shifted_views(xp, k, k, stride, ho, wo), axis=0)
    xs = xs.reshape(k * k, n * ho, wo * c)
    y = pallas_maxreduce(xs)
    return y.reshape(n, ho, wo, c)


# ---------------------------------------------------------------------------
# Deterministic parameter construction
# ---------------------------------------------------------------------------
class _KeyGen:
    def __init__(self, seed=0):
        self._key = jax.random.PRNGKey(seed)

    def __call__(self):
        self._key, sub = jax.random.split(self._key)
        return sub


def _conv_weight(kg, cout, cin_per_group, kh, kw):
    std = float(np.sqrt(2.0 / (cout * kh * kw)))     # kaiming-normal-like (fan_out)
    return jax.random.normal(kg(), (cout, cin_per_group, kh, kw), F32) * std


def _bn_fold(c, gamma=1.0):
    # eval-mode BN with running_mean=0, running_var=1, beta=0
    scale = jnp.full((c,), gamma / np.sqrt(1.0 + EPS), F32)
    shift = jnp.zeros((c,), F32)
    return scale, shift


def build_convblock(kg, cin, cout, k=3, stride=1, padding=1):
    return {"w": _conv_weight(kg, cout, cin, k, k), "stride": stride, "padding": padding}


def convblock(p, x):
    cout = p["w"].shape[0]
    s, sh = _bn_fold(cout)
    return conv2d(x, p["w"], p["stride"], p["padding"], s, sh, "relu")


# ---- DetailBranch ----
def build_detail(kg, in_dim=3, nf=64):
    specs = [(in_dim, nf, 2), (nf, nf, 1),
             (nf, nf, 2), (nf, nf, 1), (nf, nf, 1),
             (nf, nf * 2, 2), (nf * 2, nf * 2, 1), (nf * 2, nf * 2, 1)]
    return [build_convblock(kg, a, b, 3, s, 1) for a, b, s in specs]


def detail_branch(ps, x):
    for p in ps:
        x = convblock(p, x)
    return x


# ---- StemBlock ----
def build_stem(kg, in_dim=3, nf=16):
    return {
        "head": build_convblock(kg, in_dim, nf, 3, 2, 1),
        "left1": build_convblock(kg, nf, nf // 2, 1, 1, 0),
        "left2": build_convblock(kg, nf // 2, nf, 3, 2, 1),
        "tail": build_convblock(kg, nf * 2, nf, 3, 1, 1),
    }


def stem_block(p, x):
    x = convblock(p["head"], x)
    xl = convblock(p["left2"], convblock(p["left1"], x))
    xr = maxpool2d(x, 3, 2, 1)
    x = jnp.concatenate([xl, xr], axis=-1)   # torch.cat dim=1 (channels)
    return convblock(p["tail"], x)


# ---- GELayers ----
def build_gelayer1(kg, cin, cout, ratio=6):
    exp = cin * ratio
    return {
        "conv1": build_convblock(kg, cin, cin, 3, 1, 1),
        "dw_w": _conv_weight(kg, exp, 1, 3, 3),
        "conv2_w": _conv_weight(kg, cout, exp, 1, 1),
    }


def gelayer1(p, inputs):
    exp = p["dw_w"].shape[0]
    cin = p["conv1"]["w"].shape[0]
    mult = exp // cin
    cout = p["conv2_w"].shape[0]
    x = convblock(p["conv1"], inputs)
    s, sh = _bn_fold(exp)
    x = dwconv2d(x, p["dw_w"], 1, 1, s, sh, "relu")          # (m, c) channel order
    perm = _expansion_perm(cin, mult)
    s, sh = _bn_fold(cout, gamma=0.0)                        # last_bn -> gamma zero
    # residual add + relu fused into the 1x1 conv epilogue
    return conv2d(x, p["conv2_w"][:, perm, :, :], 1, 0, s, sh, "relu",
                  extra=inputs, extra_op="add")


def build_gelayer2(kg, cin, cout, ratio=6):
    exp = cin * ratio
    return {
        "left_conv1": build_convblock(kg, cin, cin, 3, 1, 1),
        "left_dw1_w": _conv_weight(kg, exp, 1, 3, 3),
        "left_dw2_w": _conv_weight(kg, exp, 1, 3, 3),
        "left_conv2_w": _conv_weight(kg, cout, exp, 1, 1),
        "right_dw1_w": _conv_weight(kg, cin, 1, 3, 3),
        "right_conv1_w": _conv_weight(kg, cout, cin, 1, 1),
    }


def gelayer2(p, inputs):
    exp = p["left_dw1_w"].shape[0]
    cin = p["right_dw1_w"].shape[0]
    mult = exp // cin
    cout = p["left_conv2_w"].shape[0]
    perm = _expansion_perm(cin, mult)
    lx = convblock(p["left_conv1"], inputs)
    s, sh = _bn_fold(exp)
    lx = dwconv2d(lx, p["left_dw1_w"], 2, 1, s, sh, "none")      # (m, c) order
    s, sh = _bn_fold(exp)
    lx = dwconv2d(lx, p["left_dw2_w"][perm], 1, 1, s, sh, "relu")  # stays (m, c)
    s, sh = _bn_fold(cout, gamma=0.0)                            # last_bn
    lx = conv2d(lx, p["left_conv2_w"][:, perm, :, :], 1, 0, s, sh, "none")
    s, sh = _bn_fold(cin)
    rx = dwconv2d(inputs, p["right_dw1_w"], 2, 1, s, sh, "none")
    s, sh = _bn_fold(cout)
    # left + right sum + relu fused into the right 1x1 conv epilogue
    return conv2d(rx, p["right_conv1_w"], 1, 0, s, sh, "relu", extra=lx, extra_op="add")


# ---- CEBlock ----
def build_ce(kg, cin, cout):
    return {
        "gap_conv": build_convblock(kg, cin, cout, 1, 1, 0),
        "out_conv": build_convblock(kg, cout, cout, 3, 1, 1),
    }


def ce_block(p, x):
    n, h, w, c = x.shape
    s, _ = _bn_fold(c)
    g = pallas_gap(x.reshape(n, h * w, c), s).reshape(n, 1, 1, c)
    g = convblock(p["gap_conv"], g)
    x2 = pallas_bcast_add(x, g)                  # broadcast happens in VMEM
    return convblock(p["out_conv"], x2)


# ---- SemanticBranch ----
def build_semantic(kg, nf=16):
    return {
        "stem": build_stem(kg, 3, nf),
        "s3": [build_gelayer2(kg, nf, nf * 2), build_gelayer1(kg, nf * 2, nf * 2)],
        "s4": [build_gelayer2(kg, nf * 2, nf * 4), build_gelayer1(kg, nf * 4, nf * 4)],
        "s5": [build_gelayer2(kg, nf * 4, nf * 8), build_gelayer1(kg, nf * 8, nf * 8),
               build_gelayer1(kg, nf * 8, nf * 8), build_gelayer1(kg, nf * 8, nf * 8)],
        "ce": build_ce(kg, nf * 8, nf * 8),
    }


def semantic_branch(p, x):
    s2 = stem_block(p["stem"], x)
    s3 = gelayer1(p["s3"][1], gelayer2(p["s3"][0], s2))
    s4 = gelayer1(p["s4"][1], gelayer2(p["s4"][0], s3))
    s5 = gelayer2(p["s5"][0], s4)
    for q in p["s5"][1:]:
        s5 = gelayer1(q, s5)
    out = ce_block(p["ce"], s5)
    return s2, s3, s4, s5, out


# ---- BGALayer ----
def build_bga(kg, c=128):
    return {
        "dk_dw_w": _conv_weight(kg, c, 1, 3, 3),
        "dk_pw_w": _conv_weight(kg, c, c, 1, 1),
        "dd_w": _conv_weight(kg, c, c, 3, 3),
        "su_w": _conv_weight(kg, c, c, 3, 3),
        "sk_dw_w": _conv_weight(kg, c, 1, 3, 3),
        "sk_pw_w": _conv_weight(kg, c, c, 1, 1),
        "last_w": _conv_weight(kg, c, c, 3, 3),
    }


def bga_layer(p, detail_out, semantic_out):
    c = p["last_w"].shape[0]
    s, sh = _bn_fold(c)
    su = conv2d(semantic_out, p["su_w"], 1, 1, s, sh, "none")
    su = resize_bilinear(su, su.shape[1] * 4, su.shape[2] * 4,
                         align_corners=True, act="sigmoid")
    s, sh = _bn_fold(c)
    dk = dwconv2d(detail_out, p["dk_dw_w"], 1, 1, s, sh, "none")
    # left = detail_keep * semantic_up, fused into the 1x1 conv epilogue
    left = conv2d(dk, p["dk_pw_w"], 1, 0, None, None, "none",
                  extra=su, extra_op="mul")
    s, sh = _bn_fold(c)
    dd = conv2d(detail_out, p["dd_w"], 2, 1, s, sh, "none")
    dd = avgpool2d(dd, 3, 2, 1)
    s, sh = _bn_fold(c)
    sk = dwconv2d(semantic_out, p["sk_dw_w"], 1, 1, s, sh, "none")
    sk = conv2d(sk, p["sk_pw_w"], 1, 0, None, None, "sigmoid")
    right = pallas_ew(dd, sk, "mul", "none")
    # upsample(right) + left fused into the resize epilogue
    last_sum = resize_bilinear(right, right.shape[1] * 4, right.shape[2] * 4,
                               align_corners=False, extra=left)
    s, sh = _bn_fold(c)
    return conv2d(last_sum, p["last_w"], 1, 1, s, sh, "relu")


# ---- SegHead ----
def build_seghead(kg, cin, mid, cout):
    return {
        "block": build_convblock(kg, cin, mid, 3, 1, 1),
        "out_w": _conv_weight(kg, cout, mid, 1, 1),
        "out_b": jnp.zeros((cout,), F32),
    }


def seg_head(p, x, size):
    x = convblock(p["block"], x)
    # TODO(synk): nn.Dropout(0.1) is identity in eval mode; training-mode dropout not modeled.
    x = conv2d(x, p["out_w"], 1, 0, None, None, "none", bias=p["out_b"])
    return resize_bilinear(x, size[0], size[1], align_corners=True, out_dtype=F32)


# ---- BiSeNetV2 ----
def build_bisenetv2(num_classes, seed=0):
    kg = _KeyGen(seed)
    return {
        "detail": build_detail(kg),
        "semantic": build_semantic(kg),
        "bga": build_bga(kg, 128),
        "out_head": build_seghead(kg, 128, 1024, num_classes),
        "s2_head": build_seghead(kg, 16, 128, num_classes),
        "s3_head": build_seghead(kg, 32, 128, num_classes),
        "s4_head": build_seghead(kg, 64, 128, num_classes),
        "s5_head": build_seghead(kg, 128, 128, num_classes),
    }


def bisenetv2_forward(params, x_nchw, phase="train"):
    # NCHW -> NHWC; activations flow in bf16 (MXU-native), epilogues/accumulation in f32.
    x = jnp.transpose(x_nchw, (0, 2, 3, 1)).astype(BF16)
    size = (x.shape[1], x.shape[2])
    detail_out = detail_branch(params["detail"], x)
    s2, s3, s4, s5, semantic_out = semantic_branch(params["semantic"], x)
    agg = bga_layer(params["bga"], detail_out, semantic_out)

    def to_nchw(t):
        return jnp.transpose(t, (0, 3, 1, 2))

    out = seg_head(params["out_head"], agg, size)
    if phase == "train":
        s2o = seg_head(params["s2_head"], s2, size)
        s3o = seg_head(params["s3_head"], s3, size)
        s4o = seg_head(params["s4_head"], s4, size)
        s5o = seg_head(params["s5_head"], s5, size)
        return tuple(to_nchw(t) for t in (out, s2o, s3o, s4o, s5o))
    return to_nchw(out)


if __name__ == "__main__":
    num_classes = 4
    params = build_bisenetv2(num_classes, seed=0)
    x = jax.random.normal(jax.random.PRNGKey(0), (2, 3, 64, 64), F32)
    outs = bisenetv2_forward(params, x, phase="train")
    outs = jax.block_until_ready(outs)
    assert len(outs) == 5
    for o in outs:
        assert o.shape == (2, num_classes, 64, 64), o.shape
        assert bool(jnp.all(jnp.isfinite(o)))
    print("KERNEL_OK")
</pallas_src>

<mosaic_0001>
module attributes {stable_mosaic.version = 11 : i64} {
  func.func @_matmul_kernel(%arg0: i32, %arg1: i32, %arg2: memref<512x128xbf16, #tpu.memory_space<vmem>>, %arg3: memref<128x128xbf16, #tpu.memory_space<vmem>>, %arg4: memref<1x128xf32, #tpu.memory_space<vmem>>, %arg5: memref<1x128xf32, #tpu.memory_space<vmem>>, %arg6: memref<512x128xbf16, #tpu.memory_space<vmem>>) attributes {dimension_semantics = [#tpu.dimension_semantics<parallel>, #tpu.dimension_semantics<parallel>], iteration_bounds = array<i64: 4, 1>, scalar_prefetch = 0 : i64, scratch_operands = 0 : i64, tpu.core_type = #tpu.core_type<tc>, window_params = [{transform_indices = @transform_0, window_bounds = array<i64: 512, 128>}, {transform_indices = @transform_1, window_bounds = array<i64: 128, 128>}, {transform_indices = @transform_2, window_bounds = array<i64: 1, 128>}, {transform_indices = @transform_3, window_bounds = array<i64: 1, 128>}, {transform_indices = @transform_4, window_bounds = array<i64: 512, 128>}]} {
    %c0 = arith.constant 0 : index
    %c0_0 = arith.constant 0 : index
    %0 = vector.load %arg2[%c0, %c0_0] : memref<512x128xbf16, #tpu.memory_space<vmem>>, vector<512x128xbf16>
    %c0_1 = arith.constant 0 : index
    %c0_2 = arith.constant 0 : index
    %1 = vector.load %arg3[%c0_1, %c0_2] : memref<128x128xbf16, #tpu.memory_space<vmem>>, vector<128x128xbf16>
    %cst = arith.constant dense<0.000000e+00> : vector<512x128xf32>
    %2 = tpu.matmul %0, %1, %cst {dimension_numbers = #tpu.dot_dimension_numbers<[1], [0], [0], [1], [0, 0, 1, 1], [], []>} : vector<512x128xbf16>, vector<128x128xbf16>, vector<512x128xf32> -> vector<512x128xf32>
    %c0_3 = arith.constant 0 : index
    %c0_4 = arith.constant 0 : index
    %3 = vector.load %arg4[%c0_3, %c0_4] : memref<1x128xf32, #tpu.memory_space<vmem>>, vector<1x128xf32>
    %4 = vector.broadcast %3 : vector<1x128xf32> to vector<512x128xf32>
    %5 = arith.mulf %2, %4 : vector<512x128xf32>
    %c0_5 = arith.constant 0 : index
    %c0_6 = arith.constant 0 : index
    %6 = vector.load %arg5[%c0_5, %c0_6] : memref<1x128xf32, #tpu.memory_space<vmem>>, vector<1x128xf32>
    %7 = vector.broadcast %6 : vector<1x128xf32> to vector<512x128xf32>
    %8 = arith.addf %5, %7 : vector<512x128xf32>
    %cst_7 = arith.constant 0.000000e+00 : f32
    %9 = vector.broadcast %cst_7 : f32 to vector<512x128xf32>
    %10 = arith.maximumf %8, %9 : vector<512x128xf32>
    %11 = arith.truncf %10 : vector<512x128xf32> to vector<512x128xbf16>
    %c0_8 = arith.constant 0 : index
    %c0_9 = arith.constant 0 : index
    %12 = vector.load %arg6[%c0_8, %c0_9] : memref<512x128xbf16, #tpu.memory_space<vmem>>, vector<512x128xbf16>
    tpu.vector_store %arg6[%c0_8, %c0_9], %11 {strides = array<i32>} : memref<512x128xbf16, #tpu.memory_space<vmem>>, vector<512x128xbf16>,
    return
  }
  func.func @transform_0(%arg0: i32, %arg1: i32) -> (i32, i32) {
    %c0_i32 = arith.constant 0 : i32
    %c0_i32_0 = arith.constant 0 : i32
    return %arg0, %c0_i32 : i32, i32
  }
  func.func @transform_1(%arg0: i32, %arg1: i32) -> (i32, i32) {
    %c0_i32 = arith.constant 0 : i32
    %c0_i32_0 = arith.constant 0 : i32
    return %c0_i32, %arg1 : i32, i32
  }
  func.func @transform_2(%arg0: i32, %arg1: i32) -> (i32, i32) {
    %c0_i32 = arith.constant 0 : i32
    %c0_i32_0 = arith.constant 0 : i32
    return %c0_i32, %arg1 : i32, i32
  }
  func.func @transform_3(%arg0: i32, %arg1: i32) -> (i32, i32) {
    %c0_i32 = arith.constant 0 : i32
    %c0_i32_0 = arith.constant 0 : i32
    return %c0_i32, %arg1 : i32, i32
  }
  func.func @transform_4(%arg0: i32, %arg1: i32) -> (i32, i32) {
    %c0_i32 = arith.constant 0 : i32
    return %arg0, %arg1 : i32, i32
  }
}

</mosaic_0001>

<bundles_post_ra>
// kernel: tpu_custom_call.1
= control target key start
LH: loop header
LB: loop body
LE: loop exit
PB: predicated region body
PF: predicated region fallthrough
CT: control target
= control target key end

     0   :  { %s2755_s0 = inlined_call_operand.hbm [shape: bf16[2048,128], index: 0, kind: input, shape index: {}]   ;;  %s2756_s1 = inlined_call_operand.hbm [shape: bf16[128,128], index: 1, kind: input, shape index: {}]   ;;  %s2757_s2 = inlined_call_operand.vmem [shape: f32[1,128], index: 2, kind: input, shape index: {}]   ;;  %s2758_s3 = inlined_call_operand.vmem [shape: f32[1,128], index: 3, kind: input, shape index: {}]   ;;  %s2759_s4 = inlined_call_operand.hbm [shape: bf16[2048,128], index: 4, kind: output, shape index: {}]  }
   0x1   :  { %2763 = sst [smem:[#allocation11_spill]] %s2756_s1 }
   0x2   :  { %9 = vsyncpa [#allocation3], 0 }
   0x3   :  { %11 = vsyncpa [#allocation3 + $0x1], 0 }
   0x4   :  { %12 = vsyncpa [#allocation6], 0 }
   0x5   :  { %13 = vsyncpa [#allocation4], 0 }
   0x6   :  { %15 = vsyncpa [#allocation4 + $0x1], 0  ;;  %s2359_s15 = smov 0   ;;  %s2361_s16 = smov 0  }
   0x7   :  { %s2363_s17 = smov 0   ;;  %s2365_s18 = smov 0  }
   0x8   :  { %s2367_s19 = smov 0   ;;  %s2369_s20 = smov 0  }
   0x9 LB: > { %s1552_s21 = sadd.s32 4294967295, %s2325_s20   ;;  %s1553_s22 = sadd.s32 4294967294, %s2325_s20   ;;  %s2325_s20 = sphi %s2369_s20, %s21_s20   ;;  %s2321_s19 = sphi %s2367_s19, %s2782_s19   ;;  %s2317_s18 = sphi %s2365_s18, %s2781_s18   ;;  %s2313_s17 = sphi %s2363_s17, %s2780_s17   ;;  %s2309_s16 = sphi %s2361_s16, %s2779_s16   ;;  %s2305_s15 = sphi %s2359_s15, %s2778_s15  }
   0xa   : > { %p53_p0 = scmp.ne.s32.totalorder %s2309_s16, %s2305_s15  ;;  %p2393_p1 = scmp.eq.s32.totalorder %s1552_s21, 0 }
   0xb   : > { %p2397_p2 = scmp.eq.s32.totalorder %s1552_s21, 3  ;;  %p163_p3 = scmp.eq.s32.totalorder %s1553_s22, 3 }
   0xc   : > { %p2403_p4 = por %p2393_p1, %p53_p0  ;;  %p1554_p5 = scmp.ge.s32.totalorder %s2325_s20, 1 }
   0xd   : > { %p2408_p6 = por %p163_p3, %p53_p0  ;;  %p170_p7 = scmp.lt.s32.totalorder %s2325_s20, 5 }
   0xe   : > { %s2327_s28 = smov [#allocation5]   ;;  %s33_s5 = sadd.s32 1, %s2321_s19 }
   0xf   : > { %s2767_s26 = scalar_select %p2408_p6, 1, 0 }
  0x10   : > { %p2413_p8 = pnand %p1554_p5, %p170_p7  ;;  %s184_s29 = sshll.u32 %s2327_s28, 4  ;;  %s185_s29 = int_to_ptr.vmem [resolvable:$true] %s184_s29 }
  0x11   : > { %s2198_s6 = scalar_lea.vmem %s185_s29, 1024  ;;  %p2206_p3 = scmp.lt.s32.totalorder %s185_s29, %s185_s29 }
  0x12   : > { %p2078_p9 = pneg %p2413_p8  ;;  %p2199_p12 = scmp.ne.s32.totalorder %s185_s29, %s2198_s6 }
  0x13   : > { %p2207_p5 = scmp.lt.s32.totalorder %s2198_s6, %s2198_s6 }
  0x14   : > { %p2421_p10 = pnand %p2078_p9, %p2393_p1 }
  0x15   : > { %p2208_p7 = por %p2207_p5, %p2206_p3 }
  0x16   : > { %p2189_p11 = pneg %p2421_p10 }
  0x18   : > { %p2201_p13 = pnand %p2199_p12, %p2189_p11 }
  0x1a   : > { %p2202_p0 = pneg %p2201_p13 }
  0x1c   : > { %p2209_p6 = pnand %p2208_p7, %p2202_p0 }
  0x1e   : > { %2212 = shalt.err (!%p2209_p6)
}
  0x1f   : > { %s2760_s7 = smov 64   ;;  %s2761_s8 = smov 4  }
  0x20   : > { %s2770_s1 = sld [smem:[#allocation11_spill]]  ;;  %p35_p6 = scmp.ge.s32.totalorder %s33_s5, 4 }
  0x21   : > { %s40_s11 = sadd.s32 1, %s2313_s17  ;;  %p47_p9 = scmp.ne.s32.totalorder %s2313_s17, %s2309_s16 }
  0x22   : > { %p48_p11 = scmp.eq.s32.totalorder %s2325_s20, 0  ;;  %s2784_s5 = smov (%p35_p6, %s33_s5), 0 }
  0x23   : > { %p2448_p13 = por %p2397_p2, %p47_p9  ;;  %s37_s14 = ssub.s32 %s2321_s19, %s2784_s5 }
  0x24   : > { %p2442_p12 = por %p48_p11, %p47_p9  ;;  %p2091_p0 = scmp.lt.s32.totalorder %s2325_s20, 4 }
  0x25   : > { %s2772_s13 = scalar_select %p2448_p13, 1, 0 }
  0x26   : > { %2081 = dma.hbm_to_vmem [thread:$0]  (!%p2421_p10), %s2770_s1, 1024, %s185_s29, [#allocation6], %s2760_s7, %s2760_s7, %s2761_s8  }
  0x27   : > { %p38_p10 = scmp.eq.s32.totalorder %s37_s14, 0  ;;  %s210_s21 = sand.u32 1, %s2313_s17  }
  0x28   : > { %s1559_s22 = sshll.u32 %s210_s21, 8  ;;  %s1677_s29 = sshll.u32 %s2321_s19, 12 }
  0x29   : > { %s2457_s28 = scalar_select %p38_p10, %s2313_s17, %s40_s11  }
  0x2a   : > { %s220_s9 = scalar_lea.hbm %s2755_s0, %s1677_s29  ;;  %s214_s10 = scalar_lea.vmem [#allocation2], %s1559_s22 }
  0x2b   : > { %s221_s7 = sshll.u32 %s214_s10, 4  ;;  %p2465_p2 = pnand %p2091_p0, %p2442_p12  ;;  %s222_s7 = int_to_ptr.vmem [resolvable:$true] %s221_s7 }
  0x2c   : > { %s211_s8 = scalar_lea.sflag [#allocation3], %s210_s21  ;;  %s2226_s14 = scalar_lea.vmem %s222_s7, 4096 }
  0x2d   : > { %p2215_p3 = pneg %p2465_p2  ;;  %p2227_p5 = scmp.ne.s32.totalorder %s222_s7, %s2226_s14 }
  0x2e   : > { %s2330_s11 = smov [#allocation2]  }
  0x2f   : > { %p2229_p7 = pnand %p2227_p5, %p2215_p3  ;;  %s2231_s1 = sshll.u32 %s2330_s11, 4  ;;  %s2232_s1 = int_to_ptr.vmem [resolvable:$false] %s2231_s1 }
  0x30   : > { %s2233_s29 = scalar_lea.vmem %s2232_s1, 8192  ;;  %p2234_p9 = scmp.lt.s32.totalorder %s222_s7, %s2232_s1 }
  0x31   : > { %p2230_p6 = pneg %p2229_p7  ;;  %p2235_p11 = scmp.lt.s32.totalorder %s2233_s29, %s2226_s14 }
  0x33   : > { %p2236_p10 = por %p2235_p11, %p2234_p9 }
  0x35   : > { %p2237_p13 = pnand %p2236_p10, %p2230_p6 }
  0x37   : > { %2240 = shalt.err (!%p2237_p13)
}
  0x38   : > { %s2774_s12 = smov 4   ;;  %s2775_s22 = smov 64  }
  0x39   : > { %2085 = dma.hbm_to_vmem [thread:$0]  (!%p2465_p2), %s220_s9, 4096, %s222_s7, %s211_s8, %s2775_s22, %s2775_s22, %s2774_s12  }
  0x3a   : > { %233 = sbr.rel (%p2413_p8) target bundleno = 376 (0x178), region = 36  ;;  %s2479_s21 = sand.u32 (!%p2413_p8), 1, %s2309_s16  }
  0x3b   : > { %s1563_s1 = sshll.u32 (!%p2413_p8), %s2479_s21, 8  ;;  %s236_s30 = scalar_lea.sflag (!%p2413_p8), [#allocation3], %s2479_s21 }
  0x3c   : > { %s2485_s6 = scalar_lea.vmem (!%p2413_p8), [#allocation2], %s1563_s1 }
  0x3f   : > { %2292 = dma.done.wait (%p2403_p4), %s236_s30, 4096  }
  0x40   : > { %2294 = vsyncadd (%p2403_p4), %s236_s30, 4294963200 }
  0x41   : > { %2296 = dma.done.wait (%p2393_p1), [#allocation6], 1024  }
  0x42   : > { %2298 = vsyncadd (%p2393_p1), [#allocation6], 4294966272  ;;  %v2147_v0 = vld [vmem:[#allocation5 + $0x38] sm:$0xff]   ;;  %v2148_v1 = vld [vmem:[#allocation5 + $0x30] sm:$0xff]   ;;  %s2559_s8 = scalar_lea.vmem [#allocation7], %s1563_s1  ;;  %s1742_s9 = sshll.u32 %s2317_s18, 12 }
  0x43   : > { %1974 = vmatprep.subr.bf16.mxu0 %v2147_v0  ;;  %2054 = vmatprep.subr.bf16.mxu1 %v2147_v0  ;;  %v2149_v2 = vld [vmem:[#allocation5 + $0x28] sm:$0xff]   ;;  %v2150_v3 = vld [vmem:[#allocation5 + $0x20] sm:$0xff]   ;;  %v2151_v6 = vld [vmem:[#allocation5 + $0x18] sm:$0xff]   ;;  %s1433_s10 = sshll.u32 %s2559_s8, 4  ;;  %s2702_s18 = scalar_lea.hbm %s2759_s4, %s1742_s9  ;;  %s2704_s10 = int_to_ptr.vmem [resolvable:$true] %s1433_s10 }
  0x44   : > { %1975 = vmatpush3.bf16.msra.mxu0 %v2147_v0  ;;  %2062 = vmatpush3.bf16.msra.mxu1 %v2147_v0  ;;  %v2155_v4 = vld [vmem:[%s2485_s6] sm:$0xff]   ;;  %v2152_v7 = vld [vmem:[#allocation5 + $0x10] sm:$0xff]   ;;  %v2153_v8 = vld [vmem:[#allocation5 + $0x8] sm:$0xff]   ;;  %s1419_s11 = scalar_lea.sflag [#allocation4], %s2479_s21  ;;  %s2241_s29 = scalar_lea.vmem %s2704_s10, 4096 }
  0x45   : > { %1976 = vmatprep.subr.bf16.mxu0 %v2148_v1  ;;  %2055 = vmatprep.subr.bf16.mxu1 %v2148_v1  ;;  %v2156_v5 = vld [vmem:[%s2485_s6 + $0x80] sm:$0xff]   ;;  %v2157_v10 = vld [vmem:[%s2485_s6 + $0x8] sm:$0xff]   ;;  %v2159_v12 = vld [vmem:[%s2485_s6 + $0x10] sm:$0xff]   ;;  %p2242_p1 = scmp.ne.s32.totalorder %s2704_s10, %s2241_s29  ;;  %p2776_p4 = scmp.ne.s32.totalorder %s2772_s13, 0 }
  0x46   : > { %1990 = vmatprep.mubr.bf16.mxu0 %v2155_v4  ;;  %2022 = vmatprep.mubr.bf16.mxu1 %v2156_v5  ;;  %v2154_v9 = vld [vmem:[#allocation5] sm:$0xff]   ;;  %v2158_v11 = vld [vmem:[%s2485_s6 + $0x88] sm:$0xff]   ;;  %v2160_v13 = vld [vmem:[%s2485_s6 + $0x90] sm:$0xff]   ;;  %s2331_s12 = smov [#allocation7]  }
  0x47   : > { %v2161_v14 = vld [vmem:[%s2485_s6 + $0x18] sm:$0xff]   ;;  %v2163_v16 = vld [vmem:[%s2485_s6 + $0x20] sm:$0xff]   ;;  %v2165_v18 = vld [vmem:[%s2485_s6 + $0x28] sm:$0xff]   ;;  %p2243_p8 = pnand %p2242_p1, %p2776_p4  ;;  %s2245_s22 = sshll.u32 %s2331_s12, 4  ;;  %s2246_s22 = int_to_ptr.vmem [resolvable:$false] %s2245_s22 }
  0x48   : > { %1977 = vmatpush3.bf16.msra.mxu0 %v2148_v1  ;;  %2063 = vmatpush3.bf16.msra.mxu1 %v2148_v1  ;;  %v2162_v15 = vld [vmem:[%s2485_s6 + $0x98] sm:$0xff]   ;;  %v2164_v17 = vld [vmem:[%s2485_s6 + $0xa0] sm:$0xff]   ;;  %v2166_v19 = vld [vmem:[%s2485_s6 + $0xa8] sm:$0xff]   ;;  %s2247_s1 = scalar_lea.vmem %s2246_s22, 8192  ;;  %p2248_p13 = scmp.lt.s32.totalorder %s2704_s10, %s2246_s22 }
  0x49   : > { %1978 = vmatprep.subr.bf16.mxu0 %v2149_v2  ;;  %2056 = vmatprep.subr.bf16.mxu1 %v2149_v2  ;;  %v2167_v20 = vld [vmem:[%s2485_s6 + $0x30] sm:$0xff]   ;;  %v2169_v22 = vld [vmem:[%s2485_s6 + $0x38] sm:$0xff]   ;;  %v2171_v24 = vld [vmem:[%s2485_s6 + $0x40] sm:$0xff]   ;;  %p2244_p12 = pneg %p2243_p8  ;;  %p2249_p0 = scmp.lt.s32.totalorder %s2247_s1, %s2241_s29 }
  0x4a   : > { %v2168_v21 = vld [vmem:[%s2485_s6 + $0xb0] sm:$0xff]   ;;  %v2170_v23 = vld [vmem:[%s2485_s6 + $0xb8] sm:$0xff]   ;;  %v2172_v25 = vld [vmem:[%s2485_s6 + $0xc0] sm:$0xff]  }
  0x4b   : > { %v2173_v26 = vld [vmem:[%s2485_s6 + $0x48] sm:$0xff]   ;;  %v2175_v28 = vld [vmem:[%s2485_s6 + $0x50] sm:$0xff]   ;;  %v2177_v30 = vld [vmem:[%s2485_s6 + $0x58] sm:$0xff]   ;;  %p2250_p2 = por %p2249_p0, %p2248_p13 }
  0x4c   : > { %1979 = vmatpush3.bf16.msra.mxu0 %v2149_v2  ;;  %2064 = vmatpush3.bf16.msra.mxu1 %v2149_v2  ;;  %v2174_v27 = vld [vmem:[%s2485_s6 + $0xc8] sm:$0xff]   ;;  %v2176_v29 = vld [vmem:[%s2485_s6 + $0xd0] sm:$0xff]   ;;  %v2178_v31 = vld [vmem:[%s2485_s6 + $0xd8] sm:$0xff]  }
  0x4d   : > { %1980 = vmatprep.subr.bf16.mxu0 %v2150_v3  ;;  %2057 = vmatprep.subr.bf16.mxu1 %v2150_v3  ;;  %v2179_v32 = vld [vmem:[%s2485_s6 + $0x60] sm:$0xff]   ;;  %v2181_v34 = vld [vmem:[%s2485_s6 + $0x68] sm:$0xff]   ;;  %v2183_v36 = vld [vmem:[%s2485_s6 + $0x70] sm:$0xff]   ;;  %p2251_p3 = pnand %p2250_p2, %p2244_p12 }
  0x4e   : > { %v2180_v33 = vld [vmem:[%s2485_s6 + $0xe0] sm:$0xff]   ;;  %v2182_v35 = vld [vmem:[%s2485_s6 + $0xe8] sm:$0xff]   ;;  %v2184_v37 = vld [vmem:[%s2485_s6 + $0xf0] sm:$0xff]  }
  0x4f   : > { %v2185_v38 = vld [vmem:[%s2485_s6 + $0x78] sm:$0xff]   ;;  %v2530_v40 = vld [vmem:[%s2757_s2] ss:$0 sm:$0xff] }
  0x50   : > { %1981 = vmatpush3.bf16.msra.mxu0 %v2150_v3  ;;  %2065 = vmatpush3.bf16.msra.mxu1 %v2150_v3  ;;  %v2186_v39 = vld [vmem:[%s2485_s6 + $0xf8] sm:$0xff]   ;;  %v2537_v45 = vld [vmem:[%s2758_s3] ss:$0 sm:$0xff] }
  0x51   : > { %1982 = vmatprep.subr.bf16.mxu0 %v2151_v6  ;;  %2058 = vmatprep.subr.bf16.mxu1 %v2151_v6 }
  0x54   : > { %1983 = vmatpush3.bf16.msra.mxu0 %v2151_v6  ;;  %2066 = vmatpush3.bf16.msra.mxu1 %v2151_v6 }
  0x55   : > { %1984 = vmatprep.subr.bf16.mxu0 %v2152_v7  ;;  %2059 = vmatprep.subr.bf16.mxu1 %v2152_v7 }
  0x58   : > { %1985 = vmatpush3.bf16.msra.mxu0 %v2152_v7  ;;  %2067 = vmatpush3.bf16.msra.mxu1 %v2152_v7 }
  0x59   : > { %1986 = vmatprep.subr.bf16.mxu0 %v2153_v8  ;;  %2060 = vmatprep.subr.bf16.mxu1 %v2153_v8 }
  0x5c   : > { %1987 = vmatpush3.bf16.msra.mxu0 %v2153_v8  ;;  %2068 = vmatpush3.bf16.msra.mxu1 %v2153_v8 }
  0x5d   : > { %1988 = vmatprep.subr.bf16.mxu0 %v2154_v9  ;;  %2061 = vmatprep.subr.bf16.mxu1 %v2154_v9 }
  0x60   : > { %1989 = vmatpush3.bf16.msra.mxu0 %v2154_v9  ;;  %2069 = vmatpush3.bf16.msra.mxu1 %v2154_v9 }
  0x63   : > { %1991 = vmatmul.mubr.bf16.vlgmr.msra.gmra.mxu0 %v2157_v10  ;;  %2023 = vmatmul.mubr.bf16.vlgmr.msra.gmra.mxu1 %v2158_v11 }
  0x64   : > { %1994 = vmatprep.mubr.bf16.mxu0 %v2159_v12  ;;  %2026 = vmatprep.mubr.bf16.mxu1 %v2160_v13 }
  0x6b   : > { %1995 = vmatmul.mubr.bf16.gmra.mxu0 %v2161_v14  ;;  %2027 = vmatmul.mubr.bf16.gmra.mxu1 %v2162_v15 }
  0x6c   : > { %1998 = vmatprep.mubr.bf16.mxu0 %v2163_v16  ;;  %2030 = vmatprep.mubr.bf16.mxu1 %v2164_v17 }
  0x73   : > { %1999 = vmatmul.mubr.bf16.gmra.mxu0 %v2165_v18  ;;  %2031 = vmatmul.mubr.bf16.gmra.mxu1 %v2166_v19 }
  0x74   : > { %2002 = vmatprep.mubr.bf16.mxu0 %v2167_v20  ;;  %2034 = vmatprep.mubr.bf16.mxu1 %v2168_v21 }
  0x7b   : > { %2003 = vmatmul.mubr.bf16.gmra.mxu0 %v2169_v22  ;;  %2035 = vmatmul.mubr.bf16.gmra.mxu1 %v2170_v23 }
  0x7c   : > { %2006 = vmatprep.mubr.bf16.mxu0 %v2171_v24  ;;  %2038 = vmatprep.mubr.bf16.mxu1 %v2172_v25 }
  0x83   : > { %2007 = vmatmul.mubr.bf16.gmra.mxu0 %v2173_v26  ;;  %2039 = vmatmul.mubr.bf16.gmra.mxu1 %v2174_v27 }
  0x84   : > { %2010 = vmatprep.mubr.bf16.mxu0 %v2175_v28  ;;  %2042 = vmatprep.mubr.bf16.mxu1 %v2176_v29 }
  0x8b   : > { %2011 = vmatmul.mubr.bf16.gmra.mxu0 %v2177_v30  ;;  %2043 = vmatmul.mubr.bf16.gmra.mxu1 %v2178_v31 }
  0x8c   : > { %2014 = vmatprep.mubr.bf16.mxu0 %v2179_v32  ;;  %2046 = vmatprep.mubr.bf16.mxu1 %v2180_v33 }
  0x93   : > { %2015 = vmatmul.mubr.bf16.gmra.mxu0 %v2181_v34  ;;  %2047 = vmatmul.mubr.bf16.gmra.mxu1 %v2182_v35 }
  0x94   : > { %2018 = vmatprep.mubr.bf16.mxu0 %v2183_v36  ;;  %2050 = vmatprep.mubr.bf16.mxu1 %v2184_v37 }
  0x9b   : > { %2019 = vmatmul.mubr.bf16.gmra.mxu0 %v2185_v38  ;;  %2051 = vmatmul.mubr.bf16.gmra.mxu1 %v2186_v39 }
 0x123   : > { %v1992_v41 = vpop.f32.mrf.mxu0  ;;  %v2024_v42 = vpop.f32.mrf.mxu1 }
 0x124   : > { %v901_v43 = vmul.f32 %v1992_v41, %v2530_v40  ;;  %v933_v44 = vmul.f32 %v2024_v42, %v2530_v40 }
 0x125   : > { %v637_v46 = vpop.f32.mrf.mxu0  ;;  %v765_v47 = vpop.f32.mrf.mxu1 }
 0x126   : > { %v899_v48 = vmul.f32 %v2530_v40, %v637_v46  ;;  %v931_v49 = vmul.f32 %v2530_v40, %v765_v47  ;;  %v972_v52 = vadd.f32 %v2537_v45, %v901_v43  ;;  %v1004_v53 = vadd.f32 %v2537_v45, %v933_v44 }
 0x127   : > { %v1993_v50 = vpop.f32.mrf.mxu0  ;;  %v2025_v51 = vpop.f32.mrf.mxu1 }
 0x128   : > { %v902_v54 = vmul.f32 %v1993_v50, %v2530_v40  ;;  %v934_v55 = vmul.f32 %v2025_v51, %v2530_v40  ;;  %v970_v58 = vadd.f32 %v2537_v45, %v899_v48  ;;  %v1002_v59 = vadd.f32 %v2537_v45, %v931_v49 }
 0x129   : > { %v640_v56 = vpop.f32.mrf.mxu0  ;;  %v768_v57 = vpop.f32.mrf.mxu1  ;;  %v1036_v2 = vmax.f32 %v972_v52, 0.0  ;;  %v1068_v3 = vmax.f32 %v1004_v53, 0.0 }
 0x12a   : > { %v900_v60 = vmul.f32 %v2530_v40, %v640_v56  ;;  %v932_v61 = vmul.f32 %v2530_v40, %v768_v57  ;;  %v973_v62 = vadd.f32 %v2537_v45, %v902_v54  ;;  %v1005_v63 = vadd.f32 %v2537_v45, %v934_v55 }
 0x12b   : > { %v1996_v0 = vpop.f32.mrf.mxu0  ;;  %v2028_v1 = vpop.f32.mrf.mxu1  ;;  %v1034_v12 = vmax.f32 %v970_v58, 0.0  ;;  %v1066_v13 = vmax.f32 %v1002_v59, 0.0 }
 0x12c   : > { %v971_v4 = vadd.f32 %v2537_v45, %v900_v60  ;;  %v1003_v5 = vadd.f32 %v2537_v45, %v932_v61  ;;  %v1037_v6 = vmax.f32 %v973_v62, 0.0  ;;  %v1069_v7 = vmax.f32 %v1005_v63, 0.0 }
 0x12d   : > { %v905_v8 = vmul.f32 %v1996_v0, %v2530_v40  ;;  %v937_v9 = vmul.f32 %v2028_v1, %v2530_v40  ;;  %v653_v10 = vpop.f32.mrf.mxu0  ;;  %v781_v11 = vpop.f32.mrf.mxu1 }
 0x12e   : > { %v1035_v14 = vmax.f32 %v971_v4, 0.0  ;;  %v1067_v15 = vmax.f32 %v1003_v5, 0.0  ;;  %v1751_v16 = vpack.c.bf16 %v1037_v6, %v1036_v2  ;;  %v1831_v17 = vpack.c.bf16 %v1069_v7, %v1068_v3 }
 0x12f   : > { %v903_v18 = vmul.f32 %v2530_v40, %v653_v10  ;;  %v935_v19 = vmul.f32 %v2530_v40, %v781_v11  ;;  %v1997_v20 = vpop.f32.mrf.mxu0  ;;  %v2029_v21 = vpop.f32.mrf.mxu1  ;;  %v976_v24 = vadd.f32 %v2537_v45, %v905_v8  ;;  %v1008_v25 = vadd.f32 %v2537_v45, %v937_v9 }
 0x130   : > { %v1746_v22 = vpack.c.bf16 %v1035_v14, %v1034_v12  ;;  %v1826_v23 = vpack.c.bf16 %v1067_v15, %v1066_v13  ;;  %1903 = vst [vmem:[%s2559_s8 + $0x8] sm:$0xff] %v1751_v16   ;;  %1919 = vst [vmem:[%s2559_s8 + $0x88] sm:$0xff] %v1831_v17   ;;  %v906_v26 = vmul.f32 %v1997_v20, %v2530_v40 }
 0x131   : > { %v938_v27 = vmul.f32 %v2029_v21, %v2530_v40  ;;  %v656_v28 = vpop.f32.mrf.mxu0  ;;  %v784_v29 = vpop.f32.mrf.mxu1  ;;  %v974_v30 = vadd.f32 %v2537_v45, %v903_v18  ;;  %v1006_v31 = vadd.f32 %v2537_v45, %v935_v19  ;;  %v1040_v43 = vmax.f32 %v976_v24, 0.0 }
 0x132   : > { %1747 = vst [vmem:[%s2559_s8] sm:$0xff] %v1746_v22   ;;  %1918 = vst [vmem:[%s2559_s8 + $0x80] sm:$0xff] %v1826_v23   ;;  %v904_v32 = vmul.f32 %v2530_v40, %v656_v28  ;;  %v936_v33 = vmul.f32 %v2530_v40, %v784_v29  ;;  %v977_v34 = vadd.f32 %v2537_v45, %v906_v26  ;;  %v1072_v44 = vmax.f32 %v1008_v25, 0.0 }
 0x133   : > { %v1009_v35 = vadd.f32 %v2537_v45, %v938_v27  ;;  %v2000_v36 = vpop.f32.mrf.mxu0  ;;  %v2032_v37 = vpop.f32.mrf.mxu1  ;;  %v1038_v50 = vmax.f32 %v974_v30, 0.0  ;;  %v1070_v51 = vmax.f32 %v1006_v31, 0.0 }
 0x134   : > { %v975_v38 = vadd.f32 %v2537_v45, %v904_v32  ;;  %v1007_v39 = vadd.f32 %v2537_v45, %v936_v33  ;;  %v909_v41 = vmul.f32 %v2000_v36, %v2530_v40  ;;  %v941_v42 = vmul.f32 %v2032_v37, %v2530_v40 }
 0x135   : > { %v1041_v46 = vmax.f32 %v977_v34, 0.0  ;;  %v1073_v47 = vmax.f32 %v1009_v35, 0.0  ;;  %v669_v48 = vpop.f32.mrf.mxu0  ;;  %v797_v49 = vpop.f32.mrf.mxu1 }
 0x136   : > { %v1039_v52 = vmax.f32 %v975_v38, 0.0  ;;  %v1071_v53 = vmax.f32 %v1007_v39, 0.0  ;;  %v907_v56 = vmul.f32 %v2530_v40, %v669_v48  ;;  %v939_v57 = vmul.f32 %v2530_v40, %v797_v49 }
 0x137   : > { %v1761_v54 = vpack.c.bf16 %v1041_v46, %v1040_v43  ;;  %v1841_v55 = vpack.c.bf16 %v1073_v47, %v1072_v44  ;;  %v2001_v58 = vpop.f32.mrf.mxu0  ;;  %v2033_v59 = vpop.f32.mrf.mxu1  ;;  %v980_v62 = vadd.f32 %v2537_v45, %v909_v41  ;;  %v1012_v63 = vadd.f32 %v2537_v45, %v941_v42 }
 0x138   : > { %v1756_v60 = vpack.c.bf16 %v1039_v52, %v1038_v50  ;;  %v1836_v61 = vpack.c.bf16 %v1071_v53, %v1070_v51  ;;  %v910_v0 = vmul.f32 %v2001_v58, %v2530_v40  ;;  %v942_v1 = vmul.f32 %v2033_v59, %v2530_v40 }
 0x139   : > { %1905 = vst [vmem:[%s2559_s8 + $0x18] sm:$0xff] %v1761_v54   ;;  %1921 = vst [vmem:[%s2559_s8 + $0x98] sm:$0xff] %v1841_v55   ;;  %v672_v2 = vpop.f32.mrf.mxu0  ;;  %v800_v3 = vpop.f32.mrf.mxu1  ;;  %v978_v4 = vadd.f32 %v2537_v45, %v907_v56  ;;  %v1010_v5 = vadd.f32 %v2537_v45, %v939_v57  ;;  %v1044_v12 = vmax.f32 %v980_v62, 0.0  ;;  %v1076_v13 = vmax.f32 %v1012_v63, 0.0 }
 0x13a   : > { %1904 = vst [vmem:[%s2559_s8 + $0x10] sm:$0xff] %v1756_v60   ;;  %1920 = vst [vmem:[%s2559_s8 + $0x90] sm:$0xff] %v1836_v61   ;;  %v908_v6 = vmul.f32 %v2530_v40, %v672_v2  ;;  %v940_v7 = vmul.f32 %v2530_v40, %v800_v3  ;;  %v981_v8 = vadd.f32 %v2537_v45, %v910_v0 }
 0x13b   : > { %v1013_v9 = vadd.f32 %v2537_v45, %v942_v1  ;;  %v2004_v10 = vpop.f32.mrf.mxu0  ;;  %v2036_v11 = vpop.f32.mrf.mxu1  ;;  %v1042_v22 = vmax.f32 %v978_v4, 0.0  ;;  %v1074_v23 = vmax.f32 %v1010_v5, 0.0 }
 0x13c   : > { %v979_v14 = vadd.f32 %v2537_v45, %v908_v6  ;;  %v1011_v15 = vadd.f32 %v2537_v45, %v940_v7  ;;  %v1045_v16 = vmax.f32 %v981_v8, 0.0  ;;  %v913_v18 = vmul.f32 %v2004_v10, %v2530_v40 }
 0x13d   : > { %v1077_v17 = vmax.f32 %v1013_v9, 0.0  ;;  %v945_v19 = vmul.f32 %v2036_v11, %v2530_v40  ;;  %v685_v20 = vpop.f32.mrf.mxu0  ;;  %v813_v21 = vpop.f32.mrf.mxu1 }
 0x13e   : > { %v1043_v24 = vmax.f32 %v979_v14, 0.0  ;;  %v1075_v25 = vmax.f32 %v1011_v15, 0.0  ;;  %v1771_v26 = vpack.c.bf16 %v1045_v16, %v1044_v12  ;;  %v911_v28 = vmul.f32 %v2530_v40, %v685_v20 }
 0x13f   : > { %v1851_v27 = vpack.c.bf16 %v1077_v17, %v1076_v13  ;;  %v943_v29 = vmul.f32 %v2530_v40, %v813_v21  ;;  %v2005_v30 = vpop.f32.mrf.mxu0  ;;  %v2037_v31 = vpop.f32.mrf.mxu1  ;;  %v984_v34 = vadd.f32 %v2537_v45, %v913_v18  ;;  %v1016_v35 = vadd.f32 %v2537_v45, %v945_v19 }
 0x140   : > { %v1766_v32 = vpack.c.bf16 %v1043_v24, %v1042_v22  ;;  %v1846_v33 = vpack.c.bf16 %v1075_v25, %v1074_v23  ;;  %1907 = vst [vmem:[%s2559_s8 + $0x28] sm:$0xff] %v1771_v26   ;;  %v914_v36 = vmul.f32 %v2005_v30, %v2530_v40  ;;  %v946_v37 = vmul.f32 %v2037_v31, %v2530_v40 }
 0x141   : > { %1923 = vst [vmem:[%s2559_s8 + $0xa8] sm:$0xff] %v1851_v27   ;;  %v688_v38 = vpop.f32.mrf.mxu0  ;;  %v816_v39 = vpop.f32.mrf.mxu1  ;;  %v982_v41 = vadd.f32 %v2537_v45, %v911_v28  ;;  %v1014_v42 = vadd.f32 %v2537_v45, %v943_v29  ;;  %v1048_v54 = vmax.f32 %v984_v34, 0.0  ;;  %v1080_v55 = vmax.f32 %v1016_v35, 0.0 }
 0x142   : > { %1906 = vst [vmem:[%s2559_s8 + $0x20] sm:$0xff] %v1766_v32   ;;  %1922 = vst [vmem:[%s2559_s8 + $0xa0] sm:$0xff] %v1846_v33   ;;  %v912_v43 = vmul.f32 %v2530_v40, %v688_v38  ;;  %v944_v44 = vmul.f32 %v2530_v40, %v816_v39  ;;  %v985_v46 = vadd.f32 %v2537_v45, %v914_v36 }
 0x143   : > { %v1017_v47 = vadd.f32 %v2537_v45, %v946_v37  ;;  %v2008_v48 = vpop.f32.mrf.mxu0  ;;  %v2040_v49 = vpop.f32.mrf.mxu1  ;;  %v1046_v60 = vmax.f32 %v982_v41, 0.0  ;;  %v1078_v61 = vmax.f32 %v1014_v42, 0.0 }
 0x144   : > { %v983_v50 = vadd.f32 %v2537_v45, %v912_v43  ;;  %v1015_v51 = vadd.f32 %v2537_v45, %v944_v44  ;;  %v917_v52 = vmul.f32 %v2008_v48, %v2530_v40  ;;  %v949_v53 = vmul.f32 %v2040_v49, %v2530_v40 }
 0x145   : > { %v1049_v56 = vmax.f32 %v985_v46, 0.0  ;;  %v1081_v57 = vmax.f32 %v1017_v47, 0.0  ;;  %v701_v58 = vpop.f32.mrf.mxu0  ;;  %v829_v59 = vpop.f32.mrf.mxu1 }
 0x146   : > { %v1047_v62 = vmax.f32 %v983_v50, 0.0  ;;  %v1079_v63 = vmax.f32 %v1015_v51, 0.0  ;;  %v915_v2 = vmul.f32 %v2530_v40, %v701_v58  ;;  %v947_v3 = vmul.f32 %v2530_v40, %v829_v59 }
 0x147   : > { %v1781_v0 = vpack.c.bf16 %v1049_v56, %v1048_v54  ;;  %v1861_v1 = vpack.c.bf16 %v1081_v57, %v1080_v55  ;;  %v2009_v4 = vpop.f32.mrf.mxu0  ;;  %v2041_v5 = vpop.f32.mrf.mxu1  ;;  %v988_v8 = vadd.f32 %v2537_v45, %v917_v52  ;;  %v1020_v9 = vadd.f32 %v2537_v45, %v949_v53 }
 0x148   : > { %v1776_v6 = vpack.c.bf16 %v1047_v62, %v1046_v60  ;;  %v1856_v7 = vpack.c.bf16 %v1079_v63, %v1078_v61  ;;  %v918_v10 = vmul.f32 %v2009_v4, %v2530_v40  ;;  %v950_v11 = vmul.f32 %v2041_v5, %v2530_v40 }
 0x149   : > { %1909 = vst [vmem:[%s2559_s8 + $0x38] sm:$0xff] %v1781_v0   ;;  %1925 = vst [vmem:[%s2559_s8 + $0xb8] sm:$0xff] %v1861_v1   ;;  %v704_v12 = vpop.f32.mrf.mxu0  ;;  %v832_v13 = vpop.f32.mrf.mxu1  ;;  %v986_v14 = vadd.f32 %v2537_v45, %v915_v2  ;;  %v1018_v15 = vadd.f32 %v2537_v45, %v947_v3  ;;  %v1052_v22 = vmax.f32 %v988_v8, 0.0  ;;  %v1084_v23 = vmax.f32 %v1020_v9, 0.0 }
 0x14a   : > { %1908 = vst [vmem:[%s2559_s8 + $0x30] sm:$0xff] %v1776_v6   ;;  %1924 = vst [vmem:[%s2559_s8 + $0xb0] sm:$0xff] %v1856_v7   ;;  %v916_v16 = vmul.f32 %v2530_v40, %v704_v12  ;;  %v948_v17 = vmul.f32 %v2530_v40, %v832_v13  ;;  %v989_v18 = vadd.f32 %v2537_v45, %v918_v10 }
 0x14b   : > { %v1021_v19 = vadd.f32 %v2537_v45, %v950_v11  ;;  %v2012_v20 = vpop.f32.mrf.mxu0  ;;  %v2044_v21 = vpop.f32.mrf.mxu1  ;;  %v1050_v32 = vmax.f32 %v986_v14, 0.0  ;;  %v1082_v33 = vmax.f32 %v1018_v15, 0.0 }
 0x14c   : > { %v987_v24 = vadd.f32 %v2537_v45, %v916_v16  ;;  %v1019_v25 = vadd.f32 %v2537_v45, %v948_v17  ;;  %v1053_v26 = vmax.f32 %v989_v18, 0.0  ;;  %v921_v28 = vmul.f32 %v2012_v20, %v2530_v40 }
 0x14d   : > { %v1085_v27 = vmax.f32 %v1021_v19, 0.0  ;;  %v953_v29 = vmul.f32 %v2044_v21, %v2530_v40  ;;  %v717_v30 = vpop.f32.mrf.mxu0  ;;  %v845_v31 = vpop.f32.mrf.mxu1 }
 0x14e   : > { %v1051_v34 = vmax.f32 %v987_v24, 0.0  ;;  %v1083_v35 = vmax.f32 %v1019_v25, 0.0  ;;  %v1791_v36 = vpack.c.bf16 %v1053_v26, %v1052_v22  ;;  %v919_v38 = vmul.f32 %v2530_v40, %v717_v30 }
 0x14f   : > { %v1871_v37 = vpack.c.bf16 %v1085_v27, %v1084_v23  ;;  %v951_v39 = vmul.f32 %v2530_v40, %v845_v31  ;;  %v2013_v41 = vpop.f32.mrf.mxu0  ;;  %v2045_v42 = vpop.f32.mrf.mxu1  ;;  %v992_v46 = vadd.f32 %v2537_v45, %v921_v28  ;;  %v1024_v47 = vadd.f32 %v2537_v45, %v953_v29 }
 0x150   : > { %v1786_v43 = vpack.c.bf16 %v1051_v34, %v1050_v32  ;;  %v1866_v44 = vpack.c.bf16 %v1083_v35, %v1082_v33  ;;  %1911 = vst [vmem:[%s2559_s8 + $0x48] sm:$0xff] %v1791_v36   ;;  %v922_v48 = vmul.f32 %v2013_v41, %v2530_v40  ;;  %v954_v49 = vmul.f32 %v2045_v42, %v2530_v40 }
 0x151   : > { %1927 = vst [vmem:[%s2559_s8 + $0xc8] sm:$0xff] %v1871_v37   ;;  %v720_v50 = vpop.f32.mrf.mxu0  ;;  %v848_v51 = vpop.f32.mrf.mxu1  ;;  %v990_v52 = vadd.f32 %v2537_v45, %v919_v38  ;;  %v1022_v53 = vadd.f32 %v2537_v45, %v951_v39  ;;  %v1056_v0 = vmax.f32 %v992_v46, 0.0  ;;  %v1088_v1 = vmax.f32 %v1024_v47, 0.0 }
 0x152   : > { %1910 = vst [vmem:[%s2559_s8 + $0x40] sm:$0xff] %v1786_v43   ;;  %1926 = vst [vmem:[%s2559_s8 + $0xc0] sm:$0xff] %v1866_v44   ;;  %v920_v54 = vmul.f32 %v2530_v40, %v720_v50  ;;  %v952_v55 = vmul.f32 %v2530_v40, %v848_v51  ;;  %v993_v56 = vadd.f32 %v2537_v45, %v922_v48 }
 0x153   : > { %v1025_v57 = vadd.f32 %v2537_v45, %v954_v49  ;;  %v2016_v58 = vpop.f32.mrf.mxu0  ;;  %v2048_v59 = vpop.f32.mrf.mxu1  ;;  %v1054_v6 = vmax.f32 %v990_v52, 0.0  ;;  %v1086_v7 = vmax.f32 %v1022_v53, 0.0 }
 0x154   : > { %v991_v60 = vadd.f32 %v2537_v45, %v920_v54  ;;  %v1023_v61 = vadd.f32 %v2537_v45, %v952_v55  ;;  %v925_v62 = vmul.f32 %v2016_v58, %v2530_v40  ;;  %v957_v63 = vmul.f32 %v2048_v59, %v2530_v40 }
 0x155   : > { %v1057_v2 = vmax.f32 %v993_v56, 0.0  ;;  %v1089_v3 = vmax.f32 %v1025_v57, 0.0  ;;  %v733_v4 = vpop.f32.mrf.mxu0  ;;  %v861_v5 = vpop.f32.mrf.mxu1 }
 0x156   : > { %v1055_v8 = vmax.f32 %v991_v60, 0.0  ;;  %v1087_v9 = vmax.f32 %v1023_v61, 0.0  ;;  %v923_v12 = vmul.f32 %v2530_v40, %v733_v4  ;;  %v955_v13 = vmul.f32 %v2530_v40, %v861_v5 }
 0x157   : > { %v1801_v10 = vpack.c.bf16 %v1057_v2, %v1056_v0  ;;  %v1881_v11 = vpack.c.bf16 %v1089_v3, %v1088_v1  ;;  %v2017_v14 = vpop.f32.mrf.mxu0  ;;  %v2049_v15 = vpop.f32.mrf.mxu1  ;;  %v996_v18 = vadd.f32 %v2537_v45, %v925_v62  ;;  %v1028_v19 = vadd.f32 %v2537_v45, %v957_v63 }
 0x158   : > { %v1796_v16 = vpack.c.bf16 %v1055_v8, %v1054_v6  ;;  %v1876_v17 = vpack.c.bf16 %v1087_v9, %v1086_v7  ;;  %v926_v20 = vmul.f32 %v2017_v14, %v2530_v40  ;;  %v958_v21 = vmul.f32 %v2049_v15, %v2530_v40 }
 0x159   : > { %1913 = vst [vmem:[%s2559_s8 + $0x58] sm:$0xff] %v1801_v10   ;;  %1929 = vst [vmem:[%s2559_s8 + $0xd8] sm:$0xff] %v1881_v11   ;;  %v736_v22 = vpop.f32.mrf.mxu0  ;;  %v864_v23 = vpop.f32.mrf.mxu1  ;;  %v994_v24 = vadd.f32 %v2537_v45, %v923_v12  ;;  %v1026_v25 = vadd.f32 %v2537_v45, %v955_v13  ;;  %v1060_v32 = vmax.f32 %v996_v18, 0.0  ;;  %v1092_v33 = vmax.f32 %v1028_v19, 0.0 }
 0x15a   : > { %1912 = vst [vmem:[%s2559_s8 + $0x50] sm:$0xff] %v1796_v16   ;;  %1928 = vst [vmem:[%s2559_s8 + $0xd0] sm:$0xff] %v1876_v17   ;;  %v924_v26 = vmul.f32 %v2530_v40, %v736_v22  ;;  %v956_v27 = vmul.f32 %v2530_v40, %v864_v23  ;;  %v997_v28 = vadd.f32 %v2537_v45, %v926_v20 }
 0x15b   : > { %v1029_v29 = vadd.f32 %v2537_v45, %v958_v21  ;;  %v2020_v30 = vpop.f32.mrf.mxu0  ;;  %v2052_v31 = vpop.f32.mrf.mxu1  ;;  %v1058_v43 = vmax.f32 %v994_v24, 0.0  ;;  %v1090_v44 = vmax.f32 %v1026_v25, 0.0 }
 0x15c   : > { %v995_v34 = vadd.f32 %v2537_v45, %v924_v26  ;;  %v1027_v35 = vadd.f32 %v2537_v45, %v956_v27  ;;  %v1061_v36 = vmax.f32 %v997_v28, 0.0  ;;  %v929_v38 = vmul.f32 %v2020_v30, %v2530_v40 }
 0x15d   : > { %v1093_v37 = vmax.f32 %v1029_v29, 0.0  ;;  %v961_v39 = vmul.f32 %v2052_v31, %v2530_v40  ;;  %v749_v41 = vpop.f32.mrf.mxu0  ;;  %v877_v42 = vpop.f32.mrf.mxu1 }
 0x15e   : > { %v1059_v46 = vmax.f32 %v995_v34, 0.0  ;;  %v1091_v47 = vmax.f32 %v1027_v35, 0.0  ;;  %v1811_v48 = vpack.c.bf16 %v1061_v36, %v1060_v32  ;;  %v927_v50 = vmul.f32 %v2530_v40, %v749_v41 }
 0x15f   : > { %v1891_v49 = vpack.c.bf16 %v1093_v37, %v1092_v33  ;;  %v959_v51 = vmul.f32 %v2530_v40, %v877_v42  ;;  %v2021_v52 = vpop.f32.mrf.mxu0  ;;  %v2053_v53 = vpop.f32.mrf.mxu1  ;;  %v1000_v56 = vadd.f32 %v2537_v45, %v929_v38  ;;  %v1032_v57 = vadd.f32 %v2537_v45, %v961_v39 }
 0x160   : > { %v1806_v54 = vpack.c.bf16 %v1059_v46, %v1058_v43  ;;  %v1886_v55 = vpack.c.bf16 %v1091_v47, %v1090_v44  ;;  %1915 = vst [vmem:[%s2559_s8 + $0x68] sm:$0xff] %v1811_v48   ;;  %v930_v58 = vmul.f32 %v2021_v52, %v2530_v40  ;;  %v962_v59 = vmul.f32 %v2053_v53, %v2530_v40 }
 0x161   : > { %1931 = vst [vmem:[%s2559_s8 + $0xe8] sm:$0xff] %v1891_v49   ;;  %v752_v60 = vpop.f32.mrf.mxu0  ;;  %v880_v61 = vpop.f32.mrf.mxu1  ;;  %v998_v62 = vadd.f32 %v2537_v45, %v927_v50  ;;  %v1030_v63 = vadd.f32 %v2537_v45, %v959_v51  ;;  %v1064_v6 = vmax.f32 %v1000_v56, 0.0  ;;  %v1096_v7 = vmax.f32 %v1032_v57, 0.0 }
 0x162   : > { %1914 = vst [vmem:[%s2559_s8 + $0x60] sm:$0xff] %v1806_v54   ;;  %1930 = vst [vmem:[%s2559_s8 + $0xe0] sm:$0xff] %v1886_v55   ;;  %v928_v0 = vmul.f32 %v2530_v40, %v752_v60  ;;  %v960_v1 = vmul.f32 %v2530_v40, %v880_v61  ;;  %v1001_v2 = vadd.f32 %v2537_v45, %v930_v58 }
 0x163   : > { %v1033_v3 = vadd.f32 %v2537_v45, %v962_v59  ;;  %v1062_v40 = vmax.f32 %v998_v62, 0.0  ;;  %v1094_v10 = vmax.f32 %v1030_v63, 0.0 }
 0x164   : > { %v999_v4 = vadd.f32 %v2537_v45, %v928_v0  ;;  %v1031_v5 = vadd.f32 %v2537_v45, %v960_v1  ;;  %v1065_v8 = vmax.f32 %v1001_v2, 0.0 }
 0x165   : > { %v1097_v9 = vmax.f32 %v1033_v3, 0.0 }
 0x166   : > { %v1063_v11 = vmax.f32 %v999_v4, 0.0  ;;  %v1095_v12 = vmax.f32 %v1031_v5, 0.0  ;;  %v1821_v13 = vpack.c.bf16 %v1065_v8, %v1064_v6 }
 0x167   : > { %v1901_v14 = vpack.c.bf16 %v1097_v9, %v1096_v7 }
 0x168   : > { %v1816_v45 = vpack.c.bf16 %v1063_v11, %v1062_v40  ;;  %v1896_v15 = vpack.c.bf16 %v1095_v12, %v1094_v10  ;;  %1917 = vst [vmem:[%s2559_s8 + $0x78] sm:$0xff] %v1821_v13  }
 0x169   : > { %1933 = vst [vmem:[%s2559_s8 + $0xf8] sm:$0xff] %v1901_v14  }
 0x16a   : > { %1916 = vst [vmem:[%s2559_s8 + $0x70] sm:$0xff] %v1816_v45   ;;  %1932 = vst [vmem:[%s2559_s8 + $0xf0] sm:$0xff] %v1896_v15  }
 0x16b   : > { %2254 = shalt.err (!%p2251_p3)
}
 0x16c   : > { %s2255_s30 = scalar_lea.hbm %s2702_s18, 4096  ;;  %s2259_s25 = scalar_lea.hbm %s2759_s4, 16384 }
 0x16d   : > { %p2256_p5 = scmp.ne.s32.totalorder %s2702_s18, %s2255_s30  ;;  %p2260_p9 = scmp.lt.s32.totalorder %s2702_s18, %s2759_s4 }
 0x16e   : > { %p2261_p11 = scmp.lt.s32.totalorder %s2259_s25, %s2255_s30 }
 0x16f   : > { %p2257_p7 = pnand %p2256_p5, %p2776_p4 }
 0x170   : > { %p2262_p10 = por %p2261_p11, %p2260_p9 }
 0x171   : > { %p2258_p6 = pneg %p2257_p7 }
 0x173   : > { %p2263_p1 = pnand %p2262_p10, %p2258_p6 }
 0x175   : > { %2266 = shalt.err (!%p2263_p1)
}
 0x176   : > { %s2332_s8 = smov 64   ;;  %s2333_s9 = smov 4  }
 0x177   : > { %2076 = dma.vmem_to_hbm [thread:$0]  (%p2776_p4), %s2704_s10, 4096, %s2702_s18, %s1419_s11, %s2332_s8, %s2332_s8, %s2333_s9  }
 0x178 PF: > { %p2093_p8 = scmp.ge.s32.totalorder %s2325_s20, 2  ;;  %s1448_s24 = sand.u32 1, %s2305_s15  }
 0x179   : > { %p2777_p12 = scmp.ne.s32.totalorder %s2767_s26, 0  ;;  %s1449_s14 = scalar_lea.sflag [#allocation4], %s1448_s24 }
 0x17b   : > { %p2087_p13 = pnand %p2093_p8, %p2777_p12 }
 0x17d   : > { %p2088_p0 = pneg %p2087_p13 }
 0x17f   : > { %2300 = dma.done.wait (%p2088_p0), %s1449_s14, 4096  }
 0x180   : > { %2302 = vsyncadd (%p2088_p0), %s1449_s14, 4294963200  ;;  %s21_s20 = sadd.s32 1, %s2325_s20   ;;  %s2778_s15 = smov %s2309_s16 }
 0x181   : > { %p18_p2 = scmp.ge.s32.totalorder %s21_s20, 6   ;;  %s2779_s16 = smov %s2313_s17 }
 0x182   : > { %s2780_s17 = smov %s2457_s28  ;;  %s2781_s18 = smov %s2321_s19 }
 0x183   : > { %s2782_s19 = smov %s2784_s5  ;;  %20 = sbr.rel (!%p18_p2) target bundleno = 9 (0x9), region = 92 }
 0x188   :  { %1454 = vsyncpa [#allocation3], 1 }
 0x189   :  { %1456 = vsyncpa [#allocation3 + $0x1], 1 }
 0x18a   :  { %1457 = vsyncpa [#allocation6], 1 }
 0x18b   :  { %1458 = vsyncpa [#allocation4], 1 }
 0x18c   :  { %1460 = vsyncpa [#allocation4 + $0x1], 1 }

</bundles_post_ra>
